<compile_context>
chip_gen: v6e
topology: v6e:2x2x1
jax: 0.10.0
libtpu: 0.0.40
codegen_flags: <defaults>
</compile_context>

<pallas_src>
import functools

import jax
import jax.numpy as jnp
from jax.experimental import pallas as pl
from jax.experimental.pallas import tpu as pltpu


def jncf_kernel(user_ref, items_ref,
                w1u_ref, b1u_ref, w2u_ref, b2u_ref,
                w1i_ref, b1i_ref, w2i_ref, b2i_ref,
                w1d_u_ref, w1d_i_ref, b1d_ref, w2d_ref, b2d_ref,
                wp_ref,
                out_ref):
    """Fused JNCF forward for one batch tile.

    user_ref : (TB, n_item)     bf16
    items_ref: (2, TB, n_user)  bf16   ([0] = item_i rows, [1] = item_j rows)
    weights  : bf16; biases / wp / outputs: f32
    out_ref  : (2, TB, 1)       f32    ([0] = y_i, [1] = y_j)
    """
    f32 = jnp.float32
    bf16 = jnp.bfloat16
    tb = user_ref.shape[0]

    def dense_relu(x, w_ref, b_ref):
        h = jnp.dot(x, w_ref[...], preferred_element_type=f32) + b_ref[...]
        return jnp.maximum(h, 0.0)

    # ---- DF_user tower on this batch tile -----------------------------------
    uf = dense_relu(user_ref[...], w1u_ref, b1u_ref).astype(bf16)
    uf = dense_relu(uf, w2u_ref, b2u_ref).astype(bf16)                    # (TB, E)

    # ---- DF_item tower: item_i and item_j stacked along the batch axis ------
    it = jnp.concatenate([items_ref[0], items_ref[1]], axis=0)            # (2TB, n_user)
    itf = dense_relu(it, w1i_ref, b1i_ref).astype(bf16)
    itf = dense_relu(itf, w2i_ref, b2i_ref).astype(bf16)                  # (2TB, E)

    # ---- DI tower: concat([uf, itf]) @ W1 == uf @ W1[:E] + itf @ W1[E:] ------
    # The user-side projection is identical for the i- and j-heads -> compute once.
    u_proj = jnp.dot(uf, w1d_u_ref[...], preferred_element_type=f32)      # (TB, DI0)
    i_proj = jnp.dot(itf, w1d_i_ref[...], preferred_element_type=f32)     # (2TB, DI0)
    h = jnp.concatenate([u_proj, u_proj], axis=0) + i_proj + b1d_ref[...]
    h = jnp.maximum(h, 0.0).astype(bf16)
    h = dense_relu(h, w2d_ref, b2d_ref)                                   # (2TB, DI1) f32

    # ---- predict_layer (factor_dim -> 1, bias=False): VPU mul + lane reduce --
    y = jnp.sum(h * wp_ref[...], axis=-1, keepdims=True)                  # (2TB, 1) f32
    out_ref[0] = y[:tb]
    out_ref[1] = y[tb:]


def jncf_forward(user, item_i, item_j, params, *, tile_b=32):
    """Pallas-fused JNCF forward (combination='concat'). Returns (y_i, y_j), shape (B,)."""
    # TODO(synk): only combination='concat' is implemented; the 'multi' branch of the
    # PyTorch module (uf * item_feat before DI) is not exercised here.
    B, n_item = user.shape
    n_user = item_i.shape[1]
    tile_b = min(tile_b, B)
    assert B % tile_b == 0, "demo wrapper expects B to be a multiple of tile_b"
    nb = B // tile_b

    bf16 = jnp.bfloat16
    user_b = user.astype(bf16)                                    # (B, n_item)
    items = jnp.stack([item_i, item_j], axis=0).astype(bf16)      # (2, B, n_user)

    wargs = (params['w1u'].astype(bf16), params['b1u'],
             params['w2u'].astype(bf16), params['b2u'],
             params['w1i'].astype(bf16), params['b1i'],
             params['w2i'].astype(bf16), params['b2i'],
             params['w1d_u'].astype(bf16), params['w1d_i'].astype(bf16), params['b1d'],
             params['w2d'].astype(bf16), params['b2d'],
             params['wp'].reshape(1, -1).astype(jnp.float32))

    def resident(a):
        # Full-array block with a constant index_map -> stays resident in VMEM for the
        # whole grid (no re-DMA per batch tile).
        return pl.BlockSpec(a.shape, lambda i: (0,) * a.ndim)

    # TODO(synk): at production n_item/n_user the first-layer weights should be K-tiled
    # (extra 'arbitrary' grid axis + f32 accumulator) or replaced by a scalar-prefetch
    # gather for one-hot inputs; at demo scale they fit resident in VMEM.
    in_specs = (
        [pl.BlockSpec((tile_b, n_item), lambda i: (i, 0)),
         pl.BlockSpec((2, tile_b, n_user), lambda i: (0, i, 0))]
        + [resident(a) for a in wargs])

    grid_spec = pltpu.PrefetchScalarGridSpec(
        num_scalar_prefetch=0,
        grid=(nb,),
        in_specs=in_specs,
        out_specs=pl.BlockSpec((2, tile_b, 1), lambda i: (0, i, 0)),
    )

    # Advisory cost estimate so XLA schedules this custom call sensibly.
    DF0 = params['w1u'].shape[1]
    E = params['w2u'].shape[1]
    DI0 = params['w1d_u'].shape[1]
    DI1 = params['w2d'].shape[1]
    flops = 2 * B * (n_item * DF0 + DF0 * E            # DF_user tower
                     + 2 * (n_user * DF0 + DF0 * E)    # DF_item tower (i and j stacked)
                     + E * DI0 + 2 * (E * DI0)         # DI layer 1 (shared u_proj)
                     + 2 * (DI0 * DI1)                 # DI layer 2
                     + 2 * DI1)                        # predict layer
    bytes_accessed = int(user_b.size * 2 + items.size * 2
                         + sum(int(a.size) * a.dtype.itemsize for a in wargs)
                         + 2 * B * 4)

    out = pl.pallas_call(
        jncf_kernel,
        out_shape=jax.ShapeDtypeStruct((2, B, 1), jnp.float32),
        grid_spec=grid_spec,
        compiler_params=pltpu.CompilerParams(
            dimension_semantics=("parallel",)),
        cost_estimate=pl.CostEstimate(flops=int(flops), transcendentals=0,
                                      bytes_accessed=bytes_accessed),
    )(user_b, items, *wargs)

    return out[0].reshape(-1), out[1].reshape(-1)


def jncf_reference(user, item_i, item_j, params):
    """Pure-JAX reference mirroring the PyTorch forward (combination='concat') with the
    same bf16-operand / f32-accumulation casting as the kernel."""
    bf16 = jnp.bfloat16

    def dense_relu(x, w, b):
        h = jnp.dot(x.astype(bf16), w.astype(bf16),
                    preferred_element_type=jnp.float32) + b
        return jnp.maximum(h, 0.0)

    def tower(x, w1, b1, w2, b2):
        return dense_relu(dense_relu(x, w1, b1), w2, b2)

    uf = tower(user,   params['w1u'], params['b1u'], params['w2u'], params['b2u'])
    fi = tower(item_i, params['w1i'], params['b1i'], params['w2i'], params['b2i'])
    fj = tower(item_j, params['w1i'], params['b1i'], params['w2i'], params['b2i'])
    w1d = jnp.concatenate([params['w1d_u'], params['w1d_i']], axis=0)

    def head(itf):
        v = jnp.concatenate([uf, itf], axis=-1)
        h = dense_relu(v, w1d, params['b1d'])
        h = dense_relu(h, params['w2d'], params['b2d'])
        return (h @ params['wp']).reshape(-1)

    return head(fi), head(fj)


def init_params(key, n_user, n_item, DF_layers, DI_layers, embed_dim, factor_dim):
    """nn.init.normal_(w, 0, 0.01) for every Linear weight and bias (predict has no bias).
    Weights are stored [in, out] (pre-transposed from PyTorch's [out, in])."""
    keys = iter(jax.random.split(key, 32))

    def normal(shape):
        return 0.01 * jax.random.normal(next(keys), shape, dtype=jnp.float32)

    p = {}
    # DF_user tower: n_item -> DF_layers[0] -> DF_layers[1]
    p['w1u'] = normal((n_item, DF_layers[0]));       p['b1u'] = normal((1, DF_layers[0]))
    p['w2u'] = normal((DF_layers[0], DF_layers[1])); p['b2u'] = normal((1, DF_layers[1]))
    # DF_item tower: n_user -> DF_layers[0] -> DF_layers[1]
    p['w1i'] = normal((n_user, DF_layers[0]));       p['b1i'] = normal((1, DF_layers[0]))
    p['w2i'] = normal((DF_layers[0], DF_layers[1])); p['b2i'] = normal((1, DF_layers[1]))
    # DI tower: embed_dim (= 2*DF_layers[-1] for 'concat') -> DI_layers[0] -> DI_layers[1]
    E = DF_layers[-1]
    w1d = normal((embed_dim, DI_layers[0]))
    p['w1d_u'] = w1d[:E]        # rows multiplying the user-feature half of the concat
    p['w1d_i'] = w1d[E:]        # rows multiplying the item-feature half of the concat
    p['b1d'] = normal((1, DI_layers[0]))
    p['w2d'] = normal((DI_layers[0], DI_layers[1])); p['b2d'] = normal((1, DI_layers[1]))
    # predict_layer: factor_dim -> 1, bias=False
    p['wp'] = normal((factor_dim, 1))
    return p


if __name__ == "__main__":
    # Small shapes consistent with the module's forward (grid of 2 batch tiles).
    B = 64
    TILE_B = 32               # multiple of 16 (bf16 sublane pack), multiple of 8 for f32
    n_user, n_item = 128, 128
    DF_layers = [64, 32]
    DI_layers = [32, 16]
    combination = 'concat'
    embed_dim = DF_layers[-1] * (2 if combination == 'concat' else 1)
    factor_dim = DI_layers[-1]

    key = jax.random.PRNGKey(0)
    k_u, k_i, k_j, k_p = jax.random.split(key, 4)
    user   = jax.random.normal(k_u, (B, n_item), dtype=jnp.float32)
    item_i = jax.random.normal(k_i, (B, n_user), dtype=jnp.float32)
    item_j = jax.random.normal(k_j, (B, n_user), dtype=jnp.float32)

    params = init_params(k_p, n_user, n_item, DF_layers, DI_layers, embed_dim, factor_dim)

    fwd = jax.jit(functools.partial(jncf_forward, tile_b=TILE_B))
    y_i, y_j = fwd(user, item_i, item_j, params)
    jax.block_until_ready((y_i, y_j))

    ref_i, ref_j = jncf_reference(user, item_i, item_j, params)
    assert y_i.shape == (B,) and y_j.shape == (B,)
    assert jnp.allclose(y_i, ref_i, atol=1e-5, rtol=1e-3), float(jnp.max(jnp.abs(y_i - ref_i)))
    assert jnp.allclose(y_j, ref_j, atol=1e-5, rtol=1e-3), float(jnp.max(jnp.abs(y_j - ref_j)))

    print("KERNEL_OK")
</pallas_src>

<mosaic_0001>
module attributes {stable_mosaic.version = 11 : i64} {
  func.func @jncf_kernel(%arg0: i32, %arg1: memref<32x128xbf16, #tpu.memory_space<vmem>>, %arg2: memref<2x32x128xbf16, #tpu.memory_space<vmem>>, %arg3: memref<128x64xbf16, #tpu.memory_space<vmem>>, %arg4: memref<1x64xf32, #tpu.memory_space<vmem>>, %arg5: memref<64x32xbf16, #tpu.memory_space<vmem>>, %arg6: memref<1x32xf32, #tpu.memory_space<vmem>>, %arg7: memref<128x64xbf16, #tpu.memory_space<vmem>>, %arg8: memref<1x64xf32, #tpu.memory_space<vmem>>, %arg9: memref<64x32xbf16, #tpu.memory_space<vmem>>, %arg10: memref<1x32xf32, #tpu.memory_space<vmem>>, %arg11: memref<32x32xbf16, #tpu.memory_space<vmem>>, %arg12: memref<32x32xbf16, #tpu.memory_space<vmem>>, %arg13: memref<1x32xf32, #tpu.memory_space<vmem>>, %arg14: memref<32x16xbf16, #tpu.memory_space<vmem>>, %arg15: memref<1x16xf32, #tpu.memory_space<vmem>>, %arg16: memref<1x16xf32, #tpu.memory_space<vmem>>, %arg17: memref<2x32x1xf32, #tpu.memory_space<vmem>>) attributes {dimension_semantics = [#tpu.dimension_semantics<parallel>], iteration_bounds = array<i64: 2>, scalar_prefetch = 0 : i64, scratch_operands = 0 : i64, tpu.core_type = #tpu.core_type<tc>, window_params = [{transform_indices = @transform_0, window_bounds = array<i64: 32, 128>}, {transform_indices = @transform_1, window_bounds = array<i64: 2, 32, 128>}, {pipeline_mode = #tpu.pipeline_mode<synchronous>, transform_indices = @transform_2, window_bounds = array<i64: 128, 64>}, {pipeline_mode = #tpu.pipeline_mode<synchronous>, transform_indices = @transform_3, window_bounds = array<i64: 1, 64>}, {pipeline_mode = #tpu.pipeline_mode<synchronous>, transform_indices = @transform_4, window_bounds = array<i64: 64, 32>}, {pipeline_mode = #tpu.pipeline_mode<synchronous>, transform_indices = @transform_5, window_bounds = array<i64: 1, 32>}, {pipeline_mode = #tpu.pipeline_mode<synchronous>, transform_indices = @transform_6, window_bounds = array<i64: 128, 64>}, {pipeline_mode = #tpu.pipeline_mode<synchronous>, transform_indices = @transform_7, window_bounds = array<i64: 1, 64>}, {pipeline_mode = #tpu.pipeline_mode<synchronous>, transform_indices = @transform_8, window_bounds = array<i64: 64, 32>}, {pipeline_mode = #tpu.pipeline_mode<synchronous>, transform_indices = @transform_9, window_bounds = array<i64: 1, 32>}, {pipeline_mode = #tpu.pipeline_mode<synchronous>, transform_indices = @transform_10, window_bounds = array<i64: 32, 32>}, {pipeline_mode = #tpu.pipeline_mode<synchronous>, transform_indices = @transform_11, window_bounds = array<i64: 32, 32>}, {pipeline_mode = #tpu.pipeline_mode<synchronous>, transform_indices = @transform_12, window_bounds = array<i64: 1, 32>}, {pipeline_mode = #tpu.pipeline_mode<synchronous>, transform_indices = @transform_13, window_bounds = array<i64: 32, 16>}, {pipeline_mode = #tpu.pipeline_mode<synchronous>, transform_indices = @transform_14, window_bounds = array<i64: 1, 16>}, {pipeline_mode = #tpu.pipeline_mode<synchronous>, transform_indices = @transform_15, window_bounds = array<i64: 1, 16>}, {transform_indices = @transform_16, window_bounds = array<i64: 2, 32, 1>}]} {
    %c0 = arith.constant 0 : index
    %c0_0 = arith.constant 0 : index
    %0 = vector.load %arg1[%c0, %c0_0] : memref<32x128xbf16, #tpu.memory_space<vmem>>, vector<32x128xbf16>
    %c0_1 = arith.constant 0 : index
    %c0_2 = arith.constant 0 : index
    %1 = vector.load %arg3[%c0_1, %c0_2] : memref<128x64xbf16, #tpu.memory_space<vmem>>, vector<128x64xbf16>
    %cst = arith.constant dense<0.000000e+00> : vector<32x64xf32>
    %2 = tpu.matmul %0, %1, %cst {dimension_numbers = #tpu.dot_dimension_numbers<[1], [0], [0], [1], [0, 0, 1, 1], [], []>} : vector<32x128xbf16>, vector<128x64xbf16>, vector<32x64xf32> -> vector<32x64xf32>
    %c0_3 = arith.constant 0 : index
    %c0_4 = arith.constant 0 : index
    %3 = vector.load %arg4[%c0_3, %c0_4] : memref<1x64xf32, #tpu.memory_space<vmem>>, vector<1x64xf32>
    %4 = vector.broadcast %3 : vector<1x64xf32> to vector<32x64xf32>
    %5 = arith.addf %2, %4 : vector<32x64xf32>
    %cst_5 = arith.constant 0.000000e+00 : f32
    %6 = vector.broadcast %cst_5 : f32 to vector<32x64xf32>
    %7 = arith.maximumf %5, %6 : vector<32x64xf32>
    %8 = arith.truncf %7 : vector<32x64xf32> to vector<32x64xbf16>
    %c0_6 = arith.constant 0 : index
    %c0_7 = arith.constant 0 : index
    %9 = vector.load %arg5[%c0_6, %c0_7] : memref<64x32xbf16, #tpu.memory_space<vmem>>, vector<64x32xbf16>
    %cst_8 = arith.constant dense<0.000000e+00> : vector<32x32xf32>
    %10 = tpu.matmul %8, %9, %cst_8 {dimension_numbers = #tpu.dot_dimension_numbers<[1], [0], [0], [1], [0, 0, 1, 1], [], []>} : vector<32x64xbf16>, vector<64x32xbf16>, vector<32x32xf32> -> vector<32x32xf32>
    %c0_9 = arith.constant 0 : index
    %c0_10 = arith.constant 0 : index
    %11 = vector.load %arg6[%c0_9, %c0_10] : memref<1x32xf32, #tpu.memory_space<vmem>>, vector<1x32xf32>
    %12 = vector.broadcast %11 : vector<1x32xf32> to vector<32x32xf32>
    %13 = arith.addf %10, %12 : vector<32x32xf32>
    %cst_11 = arith.constant 0.000000e+00 : f32
    %14 = vector.broadcast %cst_11 : f32 to vector<32x32xf32>
    %15 = arith.maximumf %13, %14 : vector<32x32xf32>
    %16 = arith.truncf %15 : vector<32x32xf32> to vector<32x32xbf16>
    %c0_12 = arith.constant 0 : index
    %c0_13 = arith.constant 0 : index
    %c0_14 = arith.constant 0 : index
    %17 = vector.load %arg2[%c0_12, %c0_13, %c0_14] : memref<2x32x128xbf16, #tpu.memory_space<vmem>>, vector<1x32x128xbf16>
    %18 = vector.shape_cast %17 : vector<1x32x128xbf16> to vector<32x128xbf16>
    %c1 = arith.constant 1 : index
    %c0_15 = arith.constant 0 : index
    %c0_16 = arith.constant 0 : index
    %19 = vector.load %arg2[%c1, %c0_15, %c0_16] : memref<2x32x128xbf16, #tpu.memory_space<vmem>>, vector<1x32x128xbf16>
    %20 = vector.shape_cast %19 : vector<1x32x128xbf16> to vector<32x128xbf16>
    %21 = tpu.concatenate %18, %20 in 0 : vector<32x128xbf16>, vector<32x128xbf16> -> vector<64x128xbf16>
    %c0_17 = arith.constant 0 : index
    %c0_18 = arith.constant 0 : index
    %22 = vector.load %arg7[%c0_17, %c0_18] : memref<128x64xbf16, #tpu.memory_space<vmem>>, vector<128x64xbf16>
    %cst_19 = arith.constant dense<0.000000e+00> : vector<64x64xf32>
    %23 = tpu.matmul %21, %22, %cst_19 {dimension_numbers = #tpu.dot_dimension_numbers<[1], [0], [0], [1], [0, 0, 1, 1], [], []>} : vector<64x128xbf16>, vector<128x64xbf16>, vector<64x64xf32> -> vector<64x64xf32>
    %c0_20 = arith.constant 0 : index
    %c0_21 = arith.constant 0 : index
    %24 = vector.load %arg8[%c0_20, %c0_21] : memref<1x64xf32, #tpu.memory_space<vmem>>, vector<1x64xf32>
    %25 = vector.broadcast %24 : vector<1x64xf32> to vector<64x64xf32>
    %26 = arith.addf %23, %25 : vector<64x64xf32>
    %cst_22 = arith.constant 0.000000e+00 : f32
    %27 = vector.broadcast %cst_22 : f32 to vector<64x64xf32>
    %28 = arith.maximumf %26, %27 : vector<64x64xf32>
    %29 = arith.truncf %28 : vector<64x64xf32> to vector<64x64xbf16>
    %c0_23 = arith.constant 0 : index
    %c0_24 = arith.constant 0 : index
    %30 = vector.load %arg9[%c0_23, %c0_24] : memref<64x32xbf16, #tpu.memory_space<vmem>>, vector<64x32xbf16>
    %cst_25 = arith.constant dense<0.000000e+00> : vector<64x32xf32>
    %31 = tpu.matmul %29, %30, %cst_25 {dimension_numbers = #tpu.dot_dimension_numbers<[1], [0], [0], [1], [0, 0, 1, 1], [], []>} : vector<64x64xbf16>, vector<64x32xbf16>, vector<64x32xf32> -> vector<64x32xf32>
    %c0_26 = arith.constant 0 : index
    %c0_27 = arith.constant 0 : index
    %32 = vector.load %arg10[%c0_26, %c0_27] : memref<1x32xf32, #tpu.memory_space<vmem>>, vector<1x32xf32>
    %33 = vector.broadcast %32 : vector<1x32xf32> to vector<64x32xf32>
    %34 = arith.addf %31, %33 : vector<64x32xf32>
    %cst_28 = arith.constant 0.000000e+00 : f32
    %35 = vector.broadcast %cst_28 : f32 to vector<64x32xf32>
    %36 = arith.maximumf %34, %35 : vector<64x32xf32>
    %37 = arith.truncf %36 : vector<64x32xf32> to vector<64x32xbf16>
    %c0_29 = arith.constant 0 : index
    %c0_30 = arith.constant 0 : index
    %38 = vector.load %arg11[%c0_29, %c0_30] : memref<32x32xbf16, #tpu.memory_space<vmem>>, vector<32x32xbf16>
    %cst_31 = arith.constant dense<0.000000e+00> : vector<32x32xf32>
    %39 = tpu.matmul %16, %38, %cst_31 {dimension_numbers = #tpu.dot_dimension_numbers<[1], [0], [0], [1], [0, 0, 1, 1], [], []>} : vector<32x32xbf16>, vector<32x32xbf16>, vector<32x32xf32> -> vector<32x32xf32>
    %c0_32 = arith.constant 0 : index
    %c0_33 = arith.constant 0 : index
    %40 = vector.load %arg12[%c0_32, %c0_33] : memref<32x32xbf16, #tpu.memory_space<vmem>>, vector<32x32xbf16>
    %cst_34 = arith.constant dense<0.000000e+00> : vector<64x32xf32>
    %41 = tpu.matmul %37, %40, %cst_34 {dimension_numbers = #tpu.dot_dimension_numbers<[1], [0], [0], [1], [0, 0, 1, 1], [], []>} : vector<64x32xbf16>, vector<32x32xbf16>, vector<64x32xf32> -> vector<64x32xf32>
    %42 = tpu.concatenate %39, %39 in 0 : vector<32x32xf32>, vector<32x32xf32> -> vector<64x32xf32>
    %43 = arith.addf %42, %41 : vector<64x32xf32>
    %c0_35 = arith.constant 0 : index
    %c0_36 = arith.constant 0 : index
    %44 = vector.load %arg13[%c0_35, %c0_36] : memref<1x32xf32, #tpu.memory_space<vmem>>, vector<1x32xf32>
    %45 = vector.broadcast %44 : vector<1x32xf32> to vector<64x32xf32>
    %46 = arith.addf %43, %45 : vector<64x32xf32>
    %cst_37 = arith.constant 0.000000e+00 : f32
    %47 = vector.broadcast %cst_37 : f32 to vector<64x32xf32>
    %48 = arith.maximumf %46, %47 : vector<64x32xf32>
    %49 = arith.truncf %48 : vector<64x32xf32> to vector<64x32xbf16>
    %c0_38 = arith.constant 0 : index
    %c0_39 = arith.constant 0 : index
    %50 = vector.load %arg14[%c0_38, %c0_39] : memref<32x16xbf16, #tpu.memory_space<vmem>>, vector<32x16xbf16>
    %cst_40 = arith.constant dense<0.000000e+00> : vector<64x16xf32>
    %51 = tpu.matmul %49, %50, %cst_40 {dimension_numbers = #tpu.dot_dimension_numbers<[1], [0], [0], [1], [0, 0, 1, 1], [], []>} : vector<64x32xbf16>, vector<32x16xbf16>, vector<64x16xf32> -> vector<64x16xf32>
    %c0_41 = arith.constant 0 : index
    %c0_42 = arith.constant 0 : index
    %52 = vector.load %arg15[%c0_41, %c0_42] : memref<1x16xf32, #tpu.memory_space<vmem>>, vector<1x16xf32>
    %53 = vector.broadcast %52 : vector<1x16xf32> to vector<64x16xf32>
    %54 = arith.addf %51, %53 : vector<64x16xf32>
    %cst_43 = arith.constant 0.000000e+00 : f32
    %55 = vector.broadcast %cst_43 : f32 to vector<64x16xf32>
    %56 = arith.maximumf %54, %55 : vector<64x16xf32>
    %c0_44 = arith.constant 0 : index
    %c0_45 = arith.constant 0 : index
    %57 = vector.load %arg16[%c0_44, %c0_45] : memref<1x16xf32, #tpu.memory_space<vmem>>, vector<1x16xf32>
    %58 = vector.broadcast %57 : vector<1x16xf32> to vector<64x16xf32>
    %59 = arith.mulf %56, %58 : vector<64x16xf32>
    %cst_46 = arith.constant dense<0.000000e+00> : vector<64xf32>
    %60 = vector.multi_reduction <add>, %59, %cst_46 [1] : vector<64x16xf32> to vector<64xf32>
    %61 = vector.shape_cast %60 : vector<64xf32> to vector<64x1xf32>
    %62 = vector.extract_strided_slice %61 {offsets = [0, 0], sizes = [32, 1], strides = [1, 1]} : vector<64x1xf32> to vector<32x1xf32>
    %c0_47 = arith.constant 0 : index
    %c0_48 = arith.constant 0 : index
    %c0_49 = arith.constant 0 : index
    %63 = vector.load %arg17[%c0_47, %c0_48, %c0_49] : memref<2x32x1xf32, #tpu.memory_space<vmem>>, vector<1x32x1xf32>
    %64 = vector.shape_cast %63 : vector<1x32x1xf32> to vector<32x1xf32>
    %65 = vector.shape_cast %62 : vector<32x1xf32> to vector<1x32x1xf32>
    tpu.vector_store %arg17[%c0_47, %c0_48, %c0_49], %65 {strides = array<i32>} : memref<2x32x1xf32, #tpu.memory_space<vmem>>, vector<1x32x1xf32>,
    %66 = vector.extract_strided_slice %61 {offsets = [32, 0], sizes = [32, 1], strides = [1, 1]} : vector<64x1xf32> to vector<32x1xf32>
    %c1_50 = arith.constant 1 : index
    %c0_51 = arith.constant 0 : index
    %c0_52 = arith.constant 0 : index
    %67 = vector.load %arg17[%c1_50, %c0_51, %c0_52] : memref<2x32x1xf32, #tpu.memory_space<vmem>>, vector<1x32x1xf32>
    %68 = vector.shape_cast %67 : vector<1x32x1xf32> to vector<32x1xf32>
    %69 = vector.shape_cast %66 : vector<32x1xf32> to vector<1x32x1xf32>
    tpu.vector_store %arg17[%c1_50, %c0_51, %c0_52], %69 {strides = array<i32>} : memref<2x32x1xf32, #tpu.memory_space<vmem>>, vector<1x32x1xf32>,
    return
  }
  func.func @transform_0(%arg0: i32) -> (i32, i32) {
    %c0_i32 = arith.constant 0 : i32
    %c0_i32_0 = arith.constant 0 : i32
    return %arg0, %c0_i32 : i32, i32
  }
  func.func @transform_1(%arg0: i32) -> (i32, i32, i32) {
    %c0_i32 = arith.constant 0 : i32
    %c0_i32_0 = arith.constant 0 : i32
    %c0_i32_1 = arith.constant 0 : i32
    return %c0_i32, %arg0, %c0_i32_0 : i32, i32, i32
  }
  func.func @transform_2(%arg0: i32) -> (i32, i32) {
    %c0_i32 = arith.constant 0 : i32
    %c0_i32_0 = arith.constant 0 : i32
    %c0_i32_1 = arith.constant 0 : i32
    return %c0_i32, %c0_i32_0 : i32, i32
  }
  func.func @transform_3(%arg0: i32) -> (i32, i32) {
    %c0_i32 = arith.constant 0 : i32
    %c0_i32_0 = arith.constant 0 : i32
    %c0_i32_1 = arith.constant 0 : i32
    return %c0_i32, %c0_i32_0 : i32, i32
  }
  func.func @transform_4(%arg0: i32) -> (i32, i32) {
    %c0_i32 = arith.constant 0 : i32
    %c0_i32_0 = arith.constant 0 : i32
    %c0_i32_1 = arith.constant 0 : i32
    return %c0_i32, %c0_i32_0 : i32, i32
  }
  func.func @transform_5(%arg0: i32) -> (i32, i32) {
    %c0_i32 = arith.constant 0 : i32
    %c0_i32_0 = arith.constant 0 : i32
    %c0_i32_1 = arith.constant 0 : i32
    return %c0_i32, %c0_i32_0 : i32, i32
  }
  func.func @transform_6(%arg0: i32) -> (i32, i32) {
    %c0_i32 = arith.constant 0 : i32
    %c0_i32_0 = arith.constant 0 : i32
    %c0_i32_1 = arith.constant 0 : i32
    return %c0_i32, %c0_i32_0 : i32, i32
  }
  func.func @transform_7(%arg0: i32) -> (i32, i32) {
    %c0_i32 = arith.constant 0 : i32
    %c0_i32_0 = arith.constant 0 : i32
    %c0_i32_1 = arith.constant 0 : i32
    return %c0_i32, %c0_i32_0 : i32, i32
  }
  func.func @transform_8(%arg0: i32) -> (i32, i32) {
    %c0_i32 = arith.constant 0 : i32
    %c0_i32_0 = arith.constant 0 : i32
    %c0_i32_1 = arith.constant 0 : i32
    return %c0_i32, %c0_i32_0 : i32, i32
  }
  func.func @transform_9(%arg0: i32) -> (i32, i32) {
    %c0_i32 = arith.constant 0 : i32
    %c0_i32_0 = arith.constant 0 : i32
    %c0_i32_1 = arith.constant 0 : i32
    return %c0_i32, %c0_i32_0 : i32, i32
  }
  func.func @transform_10(%arg0: i32) -> (i32, i32) {
    %c0_i32 = arith.constant 0 : i32
    %c0_i32_0 = arith.constant 0 : i32
    %c0_i32_1 = arith.constant 0 : i32
    return %c0_i32, %c0_i32_0 : i32, i32
  }
  func.func @transform_11(%arg0: i32) -> (i32, i32) {
    %c0_i32 = arith.constant 0 : i32
    %c0_i32_0 = arith.constant 0 : i32
    %c0_i32_1 = arith.constant 0 : i32
    return %c0_i32, %c0_i32_0 : i32, i32
  }
  func.func @transform_12(%arg0: i32) -> (i32, i32) {
    %c0_i32 = arith.constant 0 : i32
    %c0_i32_0 = arith.constant 0 : i32
    %c0_i32_1 = arith.constant 0 : i32
    return %c0_i32, %c0_i32_0 : i32, i32
  }
  func.func @transform_13(%arg0: i32) -> (i32, i32) {
    %c0_i32 = arith.constant 0 : i32
    %c0_i32_0 = arith.constant 0 : i32
    %c0_i32_1 = arith.constant 0 : i32
    return %c0_i32, %c0_i32_0 : i32, i32
  }
  func.func @transform_14(%arg0: i32) -> (i32, i32) {
    %c0_i32 = arith.constant 0 : i32
    %c0_i32_0 = arith.constant 0 : i32
    %c0_i32_1 = arith.constant 0 : i32
    return %c0_i32, %c0_i32_0 : i32, i32
  }
  func.func @transform_15(%arg0: i32) -> (i32, i32) {
    %c0_i32 = arith.constant 0 : i32
    %c0_i32_0 = arith.constant 0 : i32
    %c0_i32_1 = arith.constant 0 : i32
    return %c0_i32, %c0_i32_0 : i32, i32
  }
  func.func @transform_16(%arg0: i32) -> (i32, i32, i32) {
    %c0_i32 = arith.constant 0 : i32
    %c0_i32_0 = arith.constant 0 : i32
    %c0_i32_1 = arith.constant 0 : i32
    return %c0_i32, %arg0, %c0_i32_0 : i32, i32, i32
  }
}

</mosaic_0001>

<bundles_post_ra>
// kernel: jncf_forward.1
= control target key start
LH: loop header
LB: loop body
LE: loop exit
PB: predicated region body
PF: predicated region fallthrough
CT: control target
= control target key end

     0   :  { %s2308_s0 = inlined_call_operand.vmem [shape: bf16[64,128], index: 0, kind: input, shape index: {}]   ;;  %s2309_s1 = inlined_call_operand.vmem [shape: bf16[2,64,128], index: 1, kind: input, shape index: {}]   ;;  %s2310_s2 = inlined_call_operand.vmem [shape: bf16[128,64], index: 2, kind: input, shape index: {}]   ;;  %s2311_s3 = inlined_call_operand.vmem [shape: f32[1,64], index: 3, kind: input, shape index: {}]   ;;  %s2312_s4 = inlined_call_operand.vmem [shape: bf16[64,32], index: 4, kind: input, shape index: {}]   ;;  %s2313_s5 = inlined_call_operand.vmem [shape: f32[1,32], index: 5, kind: input, shape index: {}]   ;;  %s2314_s6 = inlined_call_operand.vmem [shape: bf16[128,64], index: 6, kind: input, shape index: {}]   ;;  %s2315_s7 = inlined_call_operand.vmem [shape: f32[1,64], index: 7, kind: input, shape index: {}]   ;;  %s2316_s8 = inlined_call_operand.vmem [shape: bf16[64,32], index: 8, kind: input, shape index: {}]   ;;  %s2317_s9 = inlined_call_operand.vmem [shape: f32[1,32], index: 9, kind: input, shape index: {}]   ;;  %s2318_s10 = inlined_call_operand.vmem [shape: bf16[32,32], index: 10, kind: input, shape index: {}]   ;;  %s2319_s11 = inlined_call_operand.vmem [shape: bf16[32,32], index: 11, kind: input, shape index: {}]   ;;  %s2320_s12 = inlined_call_operand.vmem [shape: f32[1,32], index: 12, kind: input, shape index: {}]   ;;  %s2321_s13 = inlined_call_operand.vmem [shape: bf16[32,16], index: 13, kind: input, shape index: {}]   ;;  %s2322_s14 = inlined_call_operand.vmem [shape: f32[1,16], index: 14, kind: input, shape index: {}]   ;;  %s2323_s15 = inlined_call_operand.vmem [shape: f32[1,16], index: 15, kind: input, shape index: {}]   ;;  %s2324_s16 = inlined_call_operand.vmem [shape: f32[2,64,1], index: 16, kind: output, shape index: {}]  }
   0x1   :  { %2328 = sst [smem:[#allocation7_spill]] %s2308_s0 }
   0x2   :  { %2329 = sst [smem:[#allocation8_spill]] %s2309_s1 }
   0x3   :  { %s2073_s21 = smov 0   ;;  %s2075_s22 = smov 0  }
   0x4   :  { %s2077_s23 = smov 0  }
   0x5 LB: > { %2330 = sst [smem:[#allocation4_spill]] %s1982_s22  ;;  %s2089_s24 = sadd.s32 4294967295, %s1986_s23   ;;  %s1986_s23 = sphi %s2077_s23, %s2336_s23   ;;  %s1982_s22 = sphi %s2075_s22, %s2338_s22   ;;  %s1978_s21 = sphi %s2073_s21, %s2337_s21  }
   0x6   : > { %s2092_s25 = sadd.s32 1, %s1986_s23   ;;  %s59_s27 = sadd.s32 1, %s1982_s22 }
   0x7   : > { %2331 = sst [smem:[#allocation5_spill]] %s2092_s25  ;;  %s56_s26 = ssub.s32 %s1986_s23, %s2092_s25 }
   0x8   : > { %p57_p0 = scmp.eq.s32.totalorder %s56_s26, 0  ;;  %p66_p1 = scmp.ne.s32.totalorder %s1982_s22, %s1978_s21 }
   0x9   : > { %p67_p2 = scmp.eq.s32.totalorder %s1986_s23, 0  ;;  %p390_p3 = scmp.eq.s32.totalorder %s2089_s24, 1 }
   0xa   : > { %s2102_s28 = scalar_select %p57_p0, %s1982_s22, %s59_s27  }
   0xb   : > { %p68_p4 = por %p67_p2, %p66_p1  ;;  %p2104_p5 = por %p390_p3, %p66_p1 }
   0xc   : > { %2332 = sst [smem:[#allocation6_spill]] %s2102_s28  ;;  %p1665_p6 = scmp.ge.s32.totalorder %s1986_s23, 2 }
   0xe   : > { %454 = sbr.rel (%p1665_p6) target bundleno = 31 (0x1f), region = 72 }
  0x13   : > { %466 = sbr.rel (!%p68_p4) target bundleno = 31 (0x1f), region = 80  ;;  %s468_s30 = sand.u32 (%p68_p4), 1, %s1982_s22  }
  0x14   : > { %s1746_s0 = sshll.u32 (%p68_p4), %s1986_s23, 4  ;;  %s1666_s17 = sshll.u32 (%p68_p4), %s468_s30, 5 }
  0x15   : > { %s2334_s1 = sld [smem:[#allocation8_spill]] (%p68_p4)  ;;  %s470_s26 = scalar_lea.vmem (%p68_p4), [#allocation2], %s1666_s17 }
  0x1b   : > { %s473_s20 = scalar_lea.vmem %s2334_s1, %s1746_s0 }
  0x1c   : > { %v490_v0 = vld [vmem:[%s473_s20] sm:$0xff]   ;;  %v494_v1 = vld [vmem:[%s473_s20 + $0x8] sm:$0xff]  }
  0x1d   : > { %v498_v2 = vld [vmem:[%s473_s20 + $0x20] sm:$0xff]   ;;  %491 = vst [vmem:[%s470_s26] sm:$0xff] %v490_v0   ;;  %495 = vst [vmem:[%s470_s26 + $0x8] sm:$0xff] %v494_v1   ;;  %v502_v3 = vld [vmem:[%s473_s20 + $0x28] sm:$0xff]  }
  0x1e   : > { %499 = vst [vmem:[%s470_s26 + $0x10] sm:$0xff] %v498_v2   ;;  %503 = vst [vmem:[%s470_s26 + $0x18] sm:$0xff] %v502_v3  }
  0x1f PF: > { %p1669_p7 = scmp.ge.s32.totalorder %s1986_s23, 1  ;;  %p544_p8 = scmp.lt.s32.totalorder %s1986_s23, 3 }
  0x21   : > { %p545_p9 = pnand %p1669_p7, %p544_p8 }
  0x22   : > { %s1672_s0 = sshll.u32 (!%p545_p9), %s2089_s24, 2  ;;  %s2335_s27 = sld [smem:[#allocation7_spill]] (!%p545_p9) }
  0x23   : > { %548 = sbr.rel (%p545_p9) target bundleno = 1296 (0x510), region = 121  ;;  %p605_p10 = scmp.lt.s32.totalorder (!%p545_p9), %s1672_s0, 7 }
  0x28   : > { %v1928_v4 = vld [vmem:[%s2310_s2 + $0x38] sm:$0xff]   ;;  %v1929_v5 = vld [vmem:[%s2310_s2 + $0x30] sm:$0xff]   ;;  %s2340_s0 = smov (!%p605_p10, %s1672_s0), 7  ;;  %v1930_v6 = vld [vmem:[%s2310_s2 + $0x28] sm:$0xff]   ;;  %vm794_vm0 = vcmask 523264   ;;  %vm1181_vm1 = vcmask 261120  }
  0x29   : > { %1800 = vmatprep.subr.bf16.mxu0 %v1928_v4  ;;  %s1673_s23 = sshll.u32 %s2340_s0, 2  ;;  %v1931_v7 = vld [vmem:[%s2310_s2 + $0x20] sm:$0xff]   ;;  %v1932_v9 = vld [vmem:[%s2310_s2 + $0x18] sm:$0xff]   ;;  %v1933_v11 = vld [vmem:[%s2310_s2 + $0x10] sm:$0xff]   ;;  %s551_s0 = sand.u32 1, %s1978_s21   ;;  %vm1488_vm2 = vcmask 130048  }
  0x2a   : > { %1801 = vmatpush3.bf16.msra.mxu0 %v1928_v4  ;;  %s608_s30 = scalar_lea.vmem %s2335_s27, %s1673_s23  ;;  %v1938_v10 = vld [vmem:[%s2312_s4 + $0x18] sm:$0xff]   ;;  %v1934_v12 = vld [vmem:[%s2310_s2 + $0x8] sm:$0xff]   ;;  %v1935_v13 = vld [vmem:[%s2310_s2] sm:$0xff]   ;;  %s1670_s22 = sshll.u32 %s551_s0, 5  ;;  %vm1513_vm3 = vcmask 7168  }
  0x2b   : > { %1802 = vmatprep.subr.bf16.mxu0 %v1929_v5  ;;  %v1936_v8 = vld [vmem:[%s608_s30] sm:$0xff]   ;;  %1820 = vmatprep.subr.bf16.mxu1 %v1938_v10  ;;  %v1937_v14 = vld [vmem:[%s608_s30 + $0x8] sm:$0xff]   ;;  %v1939_v15 = vld [vmem:[%s2312_s4 + $0x10] sm:$0xff]   ;;  %s2162_s28 = scalar_lea.vmem [#allocation2], %s1670_s22  ;;  %s1671_s23 = sshll.u32 %s551_s0, 6 }
  0x2c   : > { %1816 = vmatprep.mubr.bf16.mxu0 %v1936_v8  ;;  %1821 = vmatpush3.bf16.msra.mxu1 %v1938_v10  ;;  %v1940_v16 = vld [vmem:[%s2312_s4 + $0x8] sm:$0xff]   ;;  %v1941_v17 = vld [vmem:[%s2312_s4] sm:$0xff]   ;;  %v1942_v18 = vld [vmem:[%s2314_s6 + $0x38] sm:$0xff]   ;;  %s2266_s25 = scalar_lea.vmem [#allocation3], %s1671_s23  ;;  %s1747_s21 = sshll.u32 (%p2104_p5), %s2089_s24, 5 }
  0x2d   : > { %1822 = vmatprep.subr.bf16.mxu1 %v1939_v15  ;;  %v1674_v21 = vld [vmem:[%s2311_s3] ss:$0 sm:$0xff]  ;;  %v1943_v35 = vld [vmem:[%s2314_s6 + $0x30] sm:$0xff]   ;;  %v1944_v36 = vld [vmem:[%s2314_s6 + $0x28] sm:$0xff]   ;;  %s1532_s27 = scalar_lea.vmem (%p2104_p5), %s2324_s16, %s1747_s21 }
  0x2e   : > { %1803 = vmatpush3.bf16.msra.mxu0 %v1929_v5  ;;  %v1950_v33 = vld [vmem:[%s2162_s28] sm:$0xff]   ;;  %v1946_v38 = vld [vmem:[%s2314_s6 + $0x18] sm:$0xff]   ;;  %v1947_v39 = vld [vmem:[%s2314_s6 + $0x10] sm:$0xff]  }
  0x2f   : > { %1804 = vmatprep.subr.bf16.mxu0 %v1930_v6  ;;  %v1945_v37 = vld [vmem:[%s2314_s6 + $0x20] sm:$0xff]   ;;  %v1948_v40 = vld [vmem:[%s2314_s6 + $0x8] sm:$0xff]   ;;  %v1952_v43 = vld [vmem:[%s2162_s28 + $0x10] sm:$0xff]  }
  0x30   : > { %1823 = vmatpush3.bf16.msra.mxu1 %v1939_v15  ;;  %v1949_v41 = vld [vmem:[%s2314_s6] sm:$0xff]   ;;  %v1951_v42 = vld [vmem:[%s2162_s28 + $0x8] sm:$0xff]   ;;  %v1953_v44 = vld [vmem:[%s2162_s28 + $0x18] sm:$0xff]  }
  0x31   : > { %1824 = vmatprep.subr.bf16.mxu1 %v1940_v16  ;;  %v1954_v45 = vld [vmem:[%s2316_s8 + $0x18] sm:$0xff]   ;;  %v1955_v46 = vld [vmem:[%s2316_s8 + $0x10] sm:$0xff]   ;;  %v1956_v47 = vld [vmem:[%s2316_s8 + $0x8] sm:$0xff]  }
  0x32   : > { %1805 = vmatpush3.bf16.msra.mxu0 %v1930_v6  ;;  %v1957_v48 = vld [vmem:[%s2316_s8] sm:$0xff]   ;;  %v1958_v49 = vld [vmem:[%s2318_s10 + $0x8] sm:$0xff]  }
  0x33   : > { %1806 = vmatprep.subr.bf16.mxu0 %v1931_v7  ;;  %v1960_v50 = vld [vmem:[%s2319_s11 + $0x8] sm:$0xff]   ;;  %v1700_v57 = vld [vmem:[%s2315_s7] ss:$0 sm:$0xff] }
  0x34   : > { %1825 = vmatpush3.bf16.msra.mxu1 %v1940_v16  ;;  %v1959_v10 = vld [vmem:[%s2318_s10] sm:$0xff]  }
  0x35   : > { %1826 = vmatprep.subr.bf16.mxu1 %v1941_v17 }
  0x36   : > { %1807 = vmatpush3.bf16.msra.mxu0 %v1931_v7  ;;  %v1685_v7 = vld [vmem:[%s2313_s5] ss:$0 sm:$0xff] }
  0x37   : > { %1808 = vmatprep.subr.bf16.mxu0 %v1932_v9 }
  0x38   : > { %1827 = vmatpush3.bf16.msra.mxu1 %v1941_v17 }
  0x39   : > { %1832 = vmatprep.subr.bf16.mxu1 %v1942_v18 }
  0x3a   : > { %1809 = vmatpush3.bf16.msra.mxu0 %v1932_v9 }
  0x3b   : > { %1810 = vmatprep.subr.bf16.mxu0 %v1933_v11 }
  0x3e   : > { %1811 = vmatpush3.bf16.msra.mxu0 %v1933_v11 }
  0x3f   : > { %1812 = vmatprep.subr.bf16.mxu0 %v1934_v12 }
  0x42   : > { %1813 = vmatpush3.bf16.msra.mxu0 %v1934_v12 }
  0x43   : > { %1814 = vmatprep.subr.bf16.mxu0 %v1935_v13 }
  0x46   : > { %1815 = vmatpush3.bf16.msra.mxu0 %v1935_v13 }
  0x47   : > { %1856 = vmatprep.subr.bf16.mxu0 %v1954_v45 }
  0x49   : > { %1817 = vmatmul.mubr.bf16.vlgmr.msra.gmra.mxu0 %v1937_v14 }
  0x4a   : > { %1857 = vmatpush3.bf16.msra.mxu0 %v1954_v45 }
  0x4b   : > { %1858 = vmatprep.subr.bf16.mxu0 %v1955_v46 }
  0x4e   : > { %1859 = vmatpush3.bf16.msra.mxu0 %v1955_v46 }
  0x4f   : > { %1860 = vmatprep.subr.bf16.mxu0 %v1956_v47 }
  0x52   : > { %1861 = vmatpush3.bf16.msra.mxu0 %v1956_v47 }
  0x53   : > { %1862 = vmatprep.subr.bf16.mxu0 %v1957_v48 }
  0x56   : > { %1863 = vmatpush3.bf16.msra.mxu0 %v1957_v48 }
  0x57   : > { %1872 = vmatprep.subr.bf16.mxu0 %v1958_v49 }
 0x109   : > { %v1818_v19 = vpop.f32.mrf.mxu0 }
 0x10a   : > { %v743_v25 = vadd.f32 %v1818_v19, %v1674_v21 }
 0x10b   : > { %v734_v20 = vpop.f32.mrf.mxu0 }
 0x10c   : > { %v735_v23 = vadd.f32 %v1674_v21, %v734_v20  ;;  %v751_v31 = vmax.f32 %v743_v25, 0.0 }
 0x10d   : > { %v1819_v22 = vpop.f32.mrf.mxu0 }
 0x10e   : > { %v746_v24 = vadd.f32 %v1819_v22, %v1674_v21  ;;  %v749_v29 = vmax.f32 %v735_v23, 0.0 }
 0x10f   : > { %v737_v26 = vpop.f32.mrf.mxu0 }
 0x110   : > { %v738_v27 = vadd.f32 %v1674_v21, %v737_v26  ;;  %v752_v28 = vmax.f32 %v746_v24, 0.0 }
 0x112   : > { %v750_v30 = vmax.f32 %v738_v27, 0.0  ;;  %v754_v34 = vpack.c.bf16 %v752_v28, %v751_v31 }
 0x114   : > { %v753_v32 = vpack.c.bf16 %v750_v30, %v749_v29 }
 0x116   : > { %1828 = vmatprep.mubr.msk.bf16.mxu1 %vm794_vm0, %v753_v32  ;;  %v1961_v32 = vld [vmem:[%s2319_s11] sm:$0xff]  }
 0x117   : > { %1829 = vmatmul.mubr.msk.bf16.vlgmr.msra.gmra.mxu1 %vm794_vm0, %v754_v34 }
 0x118   : > { %1833 = vmatpush3.bf16.msra.mxu1 %v1942_v18  ;;  %1848 = vmatprep.mubr.bf16.mxu1 %v1950_v33 }
 0x119   : > { %1834 = vmatprep.subr.bf16.mxu1 %v1943_v35 }
 0x11c   : > { %1835 = vmatpush3.bf16.msra.mxu1 %v1943_v35  ;;  %v1709_v35 = vld [vmem:[%s2317_s9] ss:$0 sm:$0xff] }
 0x11d   : > { %1836 = vmatprep.subr.bf16.mxu1 %v1944_v36 }
 0x120   : > { %1837 = vmatpush3.bf16.msra.mxu1 %v1944_v36 }
 0x121   : > { %1838 = vmatprep.subr.bf16.mxu1 %v1945_v37 }
 0x124   : > { %1839 = vmatpush3.bf16.msra.mxu1 %v1945_v37 }
 0x125   : > { %1840 = vmatprep.subr.bf16.mxu1 %v1946_v38 }
 0x128   : > { %1841 = vmatpush3.bf16.msra.mxu1 %v1946_v38 }
 0x129   : > { %1842 = vmatprep.subr.bf16.mxu1 %v1947_v39 }
 0x12c   : > { %1843 = vmatpush3.bf16.msra.mxu1 %v1947_v39 }
 0x12d   : > { %1844 = vmatprep.subr.bf16.mxu1 %v1948_v40 }
 0x130   : > { %1845 = vmatpush3.bf16.msra.mxu1 %v1948_v40 }
 0x131   : > { %1846 = vmatprep.subr.bf16.mxu1 %v1949_v41 }
 0x134   : > { %1847 = vmatpush3.bf16.msra.mxu1 %v1949_v41 }
 0x135   : > { %1880 = vmatprep.subr.bf16.mxu1 %v1960_v50 }
 0x137   : > { %1849 = vmatmul.mubr.bf16.vlgmr.msra.gmra.mxu1 %v1951_v42 }
 0x138   : > { %1852 = vmatprep.mubr.bf16.mxu1 %v1952_v43  ;;  %1881 = vmatpush3.bf16.msra.mxu1 %v1960_v50 }
 0x139   : > { %1882 = vmatprep.subr.bf16.mxu1 %v1961_v32 }
 0x13c   : > { %1883 = vmatpush3.bf16.msra.mxu1 %v1961_v32 }
 0x13f   : > { %1853 = vmatmul.mubr.bf16.gmra.mxu1 %v1953_v44 }
 0x1d7   : > { %v1830_v51 = vpop.f32.mrf.mxu1 }
 0x1d8   : > { %v844_v28 = vadd.f32 %v1830_v51, %v1685_v7 }
 0x1d9   : > { %v835_v52 = vpop.f32.mrf.mxu1 }
 0x1da   : > { %v836_v16 = vadd.f32 %v1685_v7, %v835_v52  ;;  %v852_v30 = vmax.f32 %v844_v28, 0.0 }
 0x1db   : > { %v1831_v53 = vpop.f32.mrf.mxu1 }
 0x1dc   : > { %v850_v23 = vmax.f32 %v836_v16, 0.0  ;;  %v847_v25 = vadd.f32 %v1831_v53, %v1685_v7 }
 0x1dd   : > { %v838_v54 = vpop.f32.mrf.mxu1 }
 0x1de   : > { %v839_v11 = vadd.f32 %v1685_v7, %v838_v54  ;;  %v853_v29 = vmax.f32 %v847_v25, 0.0 }
 0x1e0   : > { %v851_v19 = vmax.f32 %v839_v11, 0.0  ;;  %v855_v31 = vpack.c.bf16 %v853_v29, %v852_v30 }
 0x1e2   : > { %v854_v27 = vpack.c.bf16 %v851_v19, %v850_v23 }
 0x1f7   : > { %v1850_v55 = vpop.f32.mrf.mxu1 }
 0x1f8   : > { %v1003_v61 = vadd.f32 %v1850_v55, %v1700_v57 }
 0x1f9   : > { %v994_v56 = vpop.f32.mrf.mxu1 }
 0x1fa   : > { %v995_v59 = vadd.f32 %v1700_v57, %v994_v56  ;;  %v1027_v4 = vmax.f32 %v1003_v61, 0.0 }
 0x1fb   : > { %v1851_v58 = vpop.f32.mrf.mxu1 }
 0x1fc   : > { %v1006_v60 = vadd.f32 %v1851_v58, %v1700_v57  ;;  %v1025_v2 = vmax.f32 %v995_v59, 0.0 }
 0x1fd   : > { %v997_v62 = vpop.f32.mrf.mxu1 }
 0x1fe   : > { %v998_v63 = vadd.f32 %v1700_v57, %v997_v62  ;;  %v1028_v0 = vmax.f32 %v1006_v60, 0.0  ;;  %v1962_v62 = vld [vmem:[%s2321_s13 + $0x8] sm:$0xff]  }
 0x1ff   : > { %v1854_v1 = vpop.f32.mrf.mxu1 }
 0x200   : > { %v1026_v3 = vmax.f32 %v998_v63, 0.0  ;;  %v1034_v8 = vpack.c.bf16 %v1028_v0, %v1027_v4  ;;  %v1019_v14 = vadd.f32 %v1854_v1, %v1700_v57  ;;  %v1963_v63 = vld [vmem:[%s2321_s13] sm:$0xff]  }
 0x201   : > { %v1010_v5 = vpop.f32.mrf.mxu1 }
 0x202   : > { %v1033_v6 = vpack.c.bf16 %v1026_v3, %v1025_v2  ;;  %v1011_v12 = vadd.f32 %v1700_v57, %v1010_v5  ;;  %v1031_v22 = vmax.f32 %v1019_v14, 0.0 }
 0x203   : > { %v1855_v9 = vpop.f32.mrf.mxu1 }
 0x204   : > { %v1022_v13 = vadd.f32 %v1855_v9, %v1700_v57  ;;  %1864 = vmatprep.mubr.msk.bf16.mxu0 %vm794_vm0, %v1033_v6  ;;  %v1029_v20 = vmax.f32 %v1011_v12, 0.0 }
 0x205   : > { %v1013_v15 = vpop.f32.mrf.mxu1  ;;  %1865 = vmatmul.mubr.msk.bf16.vlgmr.msra.gmra.mxu0 %vm794_vm0, %v1034_v8  ;;  %v1728_v8 = vld [vmem:[%s2320_s12] ss:$0 sm:$0xff] }
 0x206   : > { %v1014_v17 = vadd.f32 %v1700_v57, %v1013_v15  ;;  %1873 = vmatpush3.bf16.msra.mxu0 %v1958_v49  ;;  %v1032_v18 = vmax.f32 %v1022_v13, 0.0 }
 0x207   : > { %1874 = vmatprep.subr.bf16.mxu0 %v1959_v10 }
 0x208   : > { %v1030_v21 = vmax.f32 %v1014_v17, 0.0  ;;  %v1036_v26 = vpack.c.bf16 %v1032_v18, %v1031_v22 }
 0x20a   : > { %v1035_v24 = vpack.c.bf16 %v1030_v21, %v1029_v20  ;;  %1875 = vmatpush3.bf16.msra.mxu0 %v1959_v10 }
 0x20b   : > { %1892 = vmatprep.subr.bf16.mxu0 %v1962_v62 }
 0x20c   : > { %1868 = vmatprep.mubr.msk.bf16.mxu0 %vm794_vm0, %v1035_v24 }
 0x20d   : > { %1869 = vmatmul.mubr.msk.bf16.gmra.mxu0 %vm794_vm0, %v1036_v26 }
 0x20e   : > { %1876 = vmatprep.mubr.msk.bf16.mxu0 %vm1181_vm1, %v854_v27 }
 0x215   : > { %1877 = vmatmul.mubr.msk.bf16.vlgmr.msra.gmra.mxu0 %vm1181_vm1, %v855_v31 }
 0x216   : > { %1893 = vmatpush3.bf16.msra.mxu0 %v1962_v62 }
 0x217   : > { %1894 = vmatprep.subr.bf16.mxu0 %v1963_v63 }
 0x21a   : > { %1895 = vmatpush3.bf16.msra.mxu0 %v1963_v63 }
 0x2c5   : > { %v1866_v33 = vpop.f32.mrf.mxu0 }
 0x2c6   : > { %v1131_v39 = vadd.f32 %v1866_v33, %v1709_v35 }
 0x2c7   : > { %v1122_v34 = vpop.f32.mrf.mxu0 }
 0x2c8   : > { %v1123_v37 = vadd.f32 %v1709_v35, %v1122_v34  ;;  %v1155_v46 = vmax.f32 %v1131_v39, 0.0 }
 0x2c9   : > { %v1867_v36 = vpop.f32.mrf.mxu0 }
 0x2ca   : > { %v1134_v38 = vadd.f32 %v1867_v36, %v1709_v35  ;;  %v1153_v44 = vmax.f32 %v1123_v37, 0.0 }
 0x2cb   : > { %v1125_v40 = vpop.f32.mrf.mxu0 }
 0x2cc   : > { %v1126_v41 = vadd.f32 %v1709_v35, %v1125_v40  ;;  %v1156_v42 = vmax.f32 %v1134_v38, 0.0 }
 0x2cd   : > { %v1870_v43 = vpop.f32.mrf.mxu0 }
 0x2ce   : > { %v1154_v45 = vmax.f32 %v1126_v41, 0.0  ;;  %v1162_v49 = vpack.c.bf16 %v1156_v42, %v1155_v46  ;;  %v1147_v53 = vadd.f32 %v1870_v43, %v1709_v35  ;;  %v1729_v41 = vld [vmem:[%s2322_s14] ss:$0 sm:$0xff] }
 0x2cf   : > { %v1138_v47 = vpop.f32.mrf.mxu0 }
 0x2d0   : > { %v1161_v48 = vpack.c.bf16 %v1154_v45, %v1153_v44  ;;  %v1139_v51 = vadd.f32 %v1709_v35, %v1138_v47  ;;  %v1159_v59 = vmax.f32 %v1147_v53, 0.0  ;;  %v1736_v45 = vld [vmem:[%s2323_s15] ss:$0 sm:$0xff] }
 0x2d1   : > { %v1871_v50 = vpop.f32.mrf.mxu0 }
 0x2d2   : > { %v1150_v52 = vadd.f32 %v1871_v50, %v1709_v35  ;;  %1884 = vmatprep.mubr.msk.bf16.mxu1 %vm1181_vm1, %v1161_v48  ;;  %v1157_v57 = vmax.f32 %v1139_v51, 0.0 }
 0x2d3   : > { %v1141_v54 = vpop.f32.mrf.mxu0  ;;  %1885 = vmatmul.mubr.msk.bf16.vlgmr.msra.gmra.mxu1 %vm1181_vm1, %v1162_v49 }
 0x2d4   : > { %v1142_v55 = vadd.f32 %v1709_v35, %v1141_v54  ;;  %v1160_v56 = vmax.f32 %v1150_v52, 0.0 }
 0x2d5   : > { %v1878_v0 = vpop.f32.mrf.mxu0 }
 0x2d6   : > { %v1158_v58 = vmax.f32 %v1142_v55, 0.0  ;;  %v1164_v61 = vpack.c.bf16 %v1160_v56, %v1159_v59 }
 0x2d7   : > { %v1222_v1 = vpop.f32.mrf.mxu0 }
 0x2d8   : > { %v1163_v60 = vpack.c.bf16 %v1158_v58, %v1157_v57 }
 0x2d9   : > { %v1879_v3 = vpop.f32.mrf.mxu0 }
 0x2da   : > { %1888 = vmatprep.mubr.msk.bf16.mxu1 %vm1181_vm1, %v1163_v60 }
 0x2db   : > { %1889 = vmatmul.mubr.msk.bf16.gmra.mxu1 %vm1181_vm1, %v1164_v61  ;;  %v1225_v10 = vpop.f32.mrf.mxu0 }
 0x393   : > { %v1886_v2 = vpop.f32.mrf.mxu1 }
 0x394   : > { %v1332_v6 = vadd.f32 %v1886_v2, %v1878_v0 }
 0x395   : > { %v1299_v4 = vpop.f32.mrf.mxu1 }
 0x396   : > { %v1330_v5 = vadd.f32 %v1299_v4, %v1222_v1  ;;  %v1347_v15 = vadd.f32 %v1728_v8, %v1332_v6 }
 0x397   : > { %v1887_v7 = vpop.f32.mrf.mxu1 }
 0x398   : > { %v1333_v9 = vadd.f32 %v1887_v7, %v1879_v3  ;;  %v1345_v12 = vadd.f32 %v1728_v8, %v1330_v5  ;;  %v1355_v23 = vmax.f32 %v1347_v15, 0.0 }
 0x399   : > { %v1302_v11 = vpop.f32.mrf.mxu1 }
 0x39a   : > { %v1348_v13 = vadd.f32 %v1728_v8, %v1333_v9  ;;  %v1331_v14 = vadd.f32 %v1302_v11, %v1225_v10  ;;  %v1353_v20 = vmax.f32 %v1345_v12, 0.0 }
 0x39b   : > { %v1890_v16 = vpop.f32.mrf.mxu1 }
 0x39c   : > { %v1346_v17 = vadd.f32 %v1728_v8, %v1331_v14  ;;  %v1356_v18 = vmax.f32 %v1348_v13, 0.0  ;;  %v1336_v24 = vadd.f32 %v1890_v16, %v1878_v0 }
 0x39d   : > { %v1315_v19 = vpop.f32.mrf.mxu1 }
 0x39e   : > { %v1354_v21 = vmax.f32 %v1346_v17, 0.0  ;;  %v1334_v22 = vadd.f32 %v1315_v19, %v1222_v1  ;;  %v1362_v28 = vpack.c.bf16 %v1356_v18, %v1355_v23  ;;  %v1351_v33 = vadd.f32 %v1728_v8, %v1336_v24 }
 0x39f   : > { %v1891_v25 = vpop.f32.mrf.mxu1 }
 0x3a0   : > { %v1361_v26 = vpack.c.bf16 %v1354_v21, %v1353_v20  ;;  %v1337_v27 = vadd.f32 %v1891_v25, %v1879_v3  ;;  %v1349_v30 = vadd.f32 %v1728_v8, %v1334_v22  ;;  %v1359_v38 = vmax.f32 %v1351_v33, 0.0 }
 0x3a1   : > { %v1318_v29 = vpop.f32.mrf.mxu1 }
 0x3a2   : > { %v1352_v31 = vadd.f32 %v1728_v8, %v1337_v27  ;;  %v1335_v32 = vadd.f32 %v1318_v29, %v1225_v10  ;;  %1896 = vmatprep.mubr.msk.bf16.mxu0 %vm1181_vm1, %v1361_v26  ;;  %v1357_v36 = vmax.f32 %v1349_v30, 0.0 }
 0x3a3   : > { %1897 = vmatmul.mubr.msk.bf16.vlgmr.msra.gmra.mxu0 %vm1181_vm1, %v1362_v28 }
 0x3a4   : > { %v1350_v34 = vadd.f32 %v1728_v8, %v1335_v32  ;;  %v1360_v35 = vmax.f32 %v1352_v31, 0.0 }
 0x3a6   : > { %v1358_v37 = vmax.f32 %v1350_v34, 0.0  ;;  %v1364_v40 = vpack.c.bf16 %v1360_v35, %v1359_v38 }
 0x3a8   : > { %v1363_v39 = vpack.c.bf16 %v1358_v37, %v1357_v36 }
 0x3aa   : > { %1900 = vmatprep.mubr.msk.bf16.mxu0 %vm1181_vm1, %v1363_v39 }
 0x3ab   : > { %1901 = vmatmul.mubr.msk.bf16.gmra.mxu0 %vm1181_vm1, %v1364_v40 }
 0x463   : > { %v1898_v42 = vpop.f32.mrf.mxu0 }
 0x464   : > { %v1443_v43 = vadd.f32 %v1898_v42, %v1729_v41 }
 0x465   : > { %v1434_v44 = vpop.f32.mrf.mxu0 }
 0x466   : > { %v1467_v46 = vmax.f32 %v1443_v43, 0.0  ;;  %v1435_v47 = vadd.f32 %v1729_v41, %v1434_v44 }
 0x467   : > { %v1899_v48 = vpop.f32.mrf.mxu0 }
 0x468   : > { %v1465_v49 = vmax.f32 %v1435_v47, 0.0  ;;  %v1446_v50 = vadd.f32 %v1899_v48, %v1729_v41  ;;  %v1482_v51 = vmul.f32 %v1736_v45, %v1467_v46 }
 0x469   : > { %v1437_v52 = vpop.f32.mrf.mxu0 }
 0x46a   : > { %v1468_v53 = vmax.f32 %v1446_v50, 0.0  ;;  %v1438_v54 = vadd.f32 %v1729_v41, %v1437_v52  ;;  %v1495_v55 = vsel %vm1488_vm2, %v1482_v51, 0.0  ;;  %v1480_v56 = vmul.f32 %v1736_v45, %v1465_v49 }
 0x46b   : > { %1496 = vadd.xlane.f32.xlu1 %v1495_v55  ;;  %v1902_v57 = vpop.f32.mrf.mxu0 }
 0x46c   : > { %v1466_v58 = vmax.f32 %v1438_v54, 0.0  ;;  %v1459_v59 = vadd.f32 %v1902_v57, %v1729_v41  ;;  %v1489_v60 = vsel %vm1488_vm2, %v1480_v56, 0.0  ;;  %v1483_v61 = vmul.f32 %v1736_v45, %v1468_v53 }
 0x46d   : > { %1490 = vadd.xlane.f32.xlu0 %v1489_v60  ;;  %v1450_v62 = vpop.f32.mrf.mxu0 }
 0x46e   : > { %v1451_v63 = vadd.f32 %v1729_v41, %v1450_v62  ;;  %v1498_v0 = vsel %vm1488_vm2, %v1483_v61, 0.0  ;;  %v1481_v1 = vmul.f32 %v1736_v45, %v1466_v58  ;;  %v1471_v3 = vmax.f32 %v1459_v59, 0.0 }
 0x46f   : > { %1499 = vadd.xlane.f32.xlu1 %v1498_v0  ;;  %v1903_v2 = vpop.f32.mrf.mxu0 }
 0x470   : > { %v1469_v4 = vmax.f32 %v1451_v63, 0.0  ;;  %v1462_v5 = vadd.f32 %v1903_v2, %v1729_v41  ;;  %v1492_v6 = vsel %vm1488_vm2, %v1481_v1, 0.0  ;;  %v1486_v13 = vmul.f32 %v1736_v45, %v1471_v3 }
 0x471   : > { %1493 = vadd.xlane.f32.xlu0 %v1492_v6  ;;  %v1453_v7 = vpop.f32.mrf.mxu0 }
 0x472   : > { %v1454_v8 = vadd.f32 %v1729_v41, %v1453_v7  ;;  %v1484_v9 = vmul.f32 %v1736_v45, %v1469_v4  ;;  %v1472_v10 = vmax.f32 %v1462_v5, 0.0  ;;  %v1507_v16 = vsel %vm1488_vm2, %v1486_v13, 0.0 }
 0x474   : > { %v1470_v11 = vmax.f32 %v1454_v8, 0.0  ;;  %v1501_v12 = vsel %vm1488_vm2, %v1484_v9, 0.0  ;;  %v1487_v17 = vmul.f32 %v1736_v45, %v1472_v10 }
 0x475   : > { %1502 = vadd.xlane.f32.xlu0 %v1501_v12 }
 0x476   : > { %v1485_v14 = vmul.f32 %v1736_v45, %v1470_v11  ;;  %v1510_v18 = vsel %vm1488_vm2, %v1487_v17, 0.0 }
 0x478   : > { %v1504_v15 = vsel %vm1488_vm2, %v1485_v14, 0.0 }
 0x479   : > { %1505 = vadd.xlane.f32.xlu1 %v1504_v15  ;;  %1508 = vadd.xlane.f32.xlu0 %v1507_v16 }
 0x47d   : > { %1511 = vadd.xlane.f32.xlu1 %v1510_v18 }
 0x4f4   : > { %v1497_v19 = vpop.xlane.xlu1 %1496 }
 0x4f5   : > { %1516 = vst.msk [vmem:[%s2266_s25 + $0x10] sm:$0xff] %vm1513_vm3, %v1497_v19 }
 0x4f6   : > { %v1491_v20 = vpop.xlane.xlu0 %1490 }
 0x4f7   : > { %1514 = vst.msk [vmem:[%s2266_s25] sm:$0xff] %vm1513_vm3, %v1491_v20 }
 0x4f8   : > { %v1500_v21 = vpop.xlane.xlu1 %1499 }
 0x4f9   : > { %1517 = vst.msk [vmem:[%s2266_s25 + $0x18] sm:$0xff] %vm1513_vm3, %v1500_v21 }
 0x4fa   : > { %v1494_v22 = vpop.xlane.xlu0 %1493 }
 0x4fb   : > { %1515 = vst.msk [vmem:[%s2266_s25 + $0x8] sm:$0xff] %vm1513_vm3, %v1494_v22 }
 0x4fc   : > { %v1579_v29 = vld [vmem:[%s2266_s25 + $0x10] sm:$0xff] (%p2104_p5) }
 0x4fd   : > { %1580 = vst [vmem:[%s1532_s27 + $0x10] sm:$0xff] (%p2104_p5), %v1579_v29 }
 0x4fe   : > { %v1503_v23 = vpop.xlane.xlu0 %1502  ;;  %v1575_v27 = vld [vmem:[%s2266_s25] sm:$0xff] (%p2104_p5) }
 0x4ff   : > { %1737 = vst.msk [vmem:[%s2266_s25 + $0x20] sm:$0xff] %vm1513_vm3, %v1503_v23  ;;  %1576 = vst [vmem:[%s1532_s27] sm:$0xff] (%p2104_p5), %v1575_v27 }
 0x500   : > { %v1581_v30 = vld [vmem:[%s2266_s25 + $0x18] sm:$0xff] (%p2104_p5) }
 0x501   : > { %1582 = vst [vmem:[%s1532_s27 + $0x18] sm:$0xff] (%p2104_p5), %v1581_v30 }
 0x502   : > { %v1506_v24 = vpop.xlane.xlu1 %1505  ;;  %v1509_v25 = vpop.xlane.xlu0 %1508  ;;  %v1577_v28 = vld [vmem:[%s2266_s25 + $0x8] sm:$0xff] (%p2104_p5) }
 0x503   : > { %1738 = vst.msk [vmem:[%s2266_s25 + $0x28] sm:$0xff] %vm1513_vm3, %v1506_v24  ;;  %1739 = vst.msk [vmem:[%s2266_s25 + $0x30] sm:$0xff] %vm1513_vm3, %v1509_v25  ;;  %1529 = sbr.rel (!%p2104_p5) target bundleno = 1296 (0x510), region = 129 }
 0x504   : > { %1578 = vst [vmem:[%s1532_s27 + $0x8] sm:$0xff] (%p2104_p5), %v1577_v28 }
 0x506   : > { %v1512_v26 = vpop.xlane.xlu1 %1511  ;;  %v1583_v31 = vld [vmem:[%s2266_s25 + $0x20] sm:$0xff] (%p2104_p5) }
 0x507   : > { %1740 = vst.msk [vmem:[%s2266_s25 + $0x38] sm:$0xff] %vm1513_vm3, %v1512_v26  ;;  %1584 = vst [vmem:[%s1532_s27 + $0x40] sm:$0xff] (%p2104_p5), %v1583_v31 }
 0x50a   : > { %v1585_v32 = vld [vmem:[%s2266_s25 + $0x28] sm:$0xff]  ;;  %v1587_v33 = vld [vmem:[%s2266_s25 + $0x30] sm:$0xff] }
 0x50b   : > { %1586 = vst [vmem:[%s1532_s27 + $0x48] sm:$0xff] %v1585_v32  ;;  %1588 = vst [vmem:[%s1532_s27 + $0x50] sm:$0xff] %v1587_v33 }
 0x50e   : > { %v1589_v34 = vld [vmem:[%s2266_s25 + $0x38] sm:$0xff] }
 0x50f   : > { %1590 = vst [vmem:[%s1532_s27 + $0x58] sm:$0xff] %v1589_v34 }
 0x510 PF: > { %s2336_s23 = sld [smem:[#allocation5_spill]] }
 0x511   : > { %s2337_s21 = sld [smem:[#allocation4_spill]] }
 0x512   : > { %s2338_s22 = sld [smem:[#allocation6_spill]] }
 0x516   : > { %p23_p11 = scmp.ge.s32.totalorder %s2336_s23, 4  }
 0x518   :  { %25 = sbr.rel (!%p23_p11) target bundleno = 5 (0x5), region = 203 }

</bundles_post_ra>
